<compile_context>
chip_gen: v7x
topology: tpu7x:2x2x1
jax: 0.10.0
libtpu: 0.0.40
codegen_flags: <defaults>
</compile_context>

<pallas_src>
import functools

import jax
import jax.numpy as jnp
from jax.experimental import pallas as pl
from jax.experimental.pallas import tpu as pltpu

_SUBLANE = 8
_LN_EPS = 1e-5                       # torch nn.LayerNorm default
_VMEM_ACT_BUDGET = 8 * 1024 * 1024   # activation-tile budget; safe on v5e/v6e/v7x
                                     # (default scoped VMEM limit is 16-32 MiB)


# ----------------------------- tiling helpers -------------------------------

def _choose_row_tile(rows, hidden, out_dim, dtype_bytes, reserved_bytes=0):
    """Largest power-of-two row tile (>= 8) whose double-buffered input+output
    tiles fit the VMEM budget; rows are padded up to a tile multiple."""
    rows8 = pl.cdiv(rows, _SUBLANE) * _SUBLANE
    per_row = 2 * (hidden + out_dim) * dtype_bytes       # 2x for double buffering
    budget = max(_VMEM_ACT_BUDGET - reserved_bytes, _SUBLANE * per_row)
    tr = 1024
    while tr > _SUBLANE and tr * per_row > budget:
        tr //= 2
    tr = min(tr, rows8)                                   # both multiples of 8
    rows_pad = pl.cdiv(rows8, tr) * tr
    return tr, rows_pad


def _pad_rows(x2d, rows_pad):
    rows = x2d.shape[0]
    if rows_pad == rows:
        return x2d
    return jnp.pad(x2d, ((0, rows_pad - rows), (0, 0)))


# ----------------------------- kernels --------------------------------------

def _fused_ln_linear_residual_kernel(x_ref, g_ref, b_ref, w_ref, bias_ref,
                                     o_ref, *, mxu_dtype):
    # out = x + (LayerNorm(x) @ W + bias)        (dropout == identity, eval mode)
    x = x_ref[...].astype(jnp.float32)
    mean = jnp.mean(x, axis=-1, keepdims=True)
    var = jnp.mean(jnp.square(x - mean), axis=-1, keepdims=True)   # biased (torch)
    inv = jax.lax.rsqrt(var + _LN_EPS)
    normed = (x - mean) * inv * g_ref[...].astype(jnp.float32) \
             + b_ref[...].astype(jnp.float32)
    # MXU matmul; operands optionally cast (e.g. bf16 on v6e/v7x), f32 accumulate.
    acc = jnp.dot(normed.astype(mxu_dtype), w_ref[...].astype(mxu_dtype),
                  preferred_element_type=jnp.float32)
    out = x + acc + bias_ref[...].astype(jnp.float32)
    o_ref[...] = out.astype(o_ref.dtype)


def _layernorm_kernel(x_ref, g_ref, b_ref, o_ref):
    x = x_ref[...].astype(jnp.float32)
    mean = jnp.mean(x, axis=-1, keepdims=True)
    var = jnp.mean(jnp.square(x - mean), axis=-1, keepdims=True)
    inv = jax.lax.rsqrt(var + _LN_EPS)
    y = (x - mean) * inv * g_ref[...].astype(jnp.float32) \
        + b_ref[...].astype(jnp.float32)
    o_ref[...] = y.astype(o_ref.dtype)


def _residual_add_kernel(x_ref, y_ref, o_ref):
    o_ref[...] = x_ref[...] + y_ref[...]    # dropout == identity (eval mode)


# ----------------------------- fused fast path -------------------------------

def sublayer_connection_fused_linear(x, gamma, beta, w, b, *, mxu_dtype=None):
    """x: [batch, seq, hidden]; sublayer(y) = y @ w + b, w: [hidden, hidden].
    Returns x + dropout(Linear(LayerNorm(x))) in a single pallas_call.
    Pass mxu_dtype=jnp.bfloat16 on v6e/v7x for full-rate MXU; LN stats stay f32.
    For very large hidden sizes an N/K grid split would be added; BERT4Rec
    hidden sizes (<=1024) fit a single resident W tile."""
    batch, seq, hidden = x.shape
    out_dim = w.shape[1]
    assert out_dim == hidden, "residual connection requires matching sizes"
    if mxu_dtype is None:
        mxu_dtype = x.dtype          # default: exact-parity f32 matmul
    w_mxu = w.astype(mxu_dtype)

    rows = batch * seq
    dtype_bytes = jnp.dtype(x.dtype).itemsize
    w_bytes = 2 * hidden * out_dim * jnp.dtype(mxu_dtype).itemsize
    tr, rows_pad = _choose_row_tile(rows, hidden, out_dim, dtype_bytes, w_bytes)
    x2d = _pad_rows(x.reshape(rows, hidden), rows_pad)

    out2d = pl.pallas_call(
        functools.partial(_fused_ln_linear_residual_kernel, mxu_dtype=mxu_dtype),
        out_shape=jax.ShapeDtypeStruct((rows_pad, out_dim), x.dtype),
        grid=(rows_pad // tr,),
        in_specs=[
            pl.BlockSpec((tr, hidden), lambda i: (i, 0)),       # x tile
            pl.BlockSpec((1, hidden), lambda i: (0, 0)),        # gamma
            pl.BlockSpec((1, hidden), lambda i: (0, 0)),        # beta
            pl.BlockSpec((hidden, out_dim), lambda i: (0, 0)),  # W (resident)
            pl.BlockSpec((1, out_dim), lambda i: (0, 0)),       # bias
        ],
        out_specs=pl.BlockSpec((tr, out_dim), lambda i: (i, 0)),
        compiler_params=pltpu.CompilerParams(
            dimension_semantics=("parallel",)),   # shards rows across v7x's 2 TCs
    )(x2d, gamma.reshape(1, hidden), beta.reshape(1, hidden),
      w_mxu, b.reshape(1, out_dim))
    return out2d[:rows].reshape(batch, seq, hidden)


# ----------------------------- generic path ----------------------------------

def pallas_layernorm(x2d, gamma, beta):
    rows, hidden = x2d.shape
    tr, rows_pad = _choose_row_tile(rows, hidden, hidden,
                                    jnp.dtype(x2d.dtype).itemsize)
    xp = _pad_rows(x2d, rows_pad)
    out = pl.pallas_call(
        _layernorm_kernel,
        out_shape=jax.ShapeDtypeStruct((rows_pad, hidden), x2d.dtype),
        grid=(rows_pad // tr,),
        in_specs=[
            pl.BlockSpec((tr, hidden), lambda i: (i, 0)),
            pl.BlockSpec((1, hidden), lambda i: (0, 0)),
            pl.BlockSpec((1, hidden), lambda i: (0, 0)),
        ],
        out_specs=pl.BlockSpec((tr, hidden), lambda i: (i, 0)),
        compiler_params=pltpu.CompilerParams(
            dimension_semantics=("parallel",)),
    )(xp, gamma.reshape(1, hidden), beta.reshape(1, hidden))
    return out[:rows]


def pallas_residual_add(x2d, y2d):
    rows, hidden = x2d.shape
    tr, rows_pad = _choose_row_tile(rows, hidden, hidden,
                                    jnp.dtype(x2d.dtype).itemsize)
    xp = _pad_rows(x2d, rows_pad)
    yp = _pad_rows(y2d, rows_pad)
    out = pl.pallas_call(
        _residual_add_kernel,
        out_shape=jax.ShapeDtypeStruct((rows_pad, hidden), x2d.dtype),
        grid=(rows_pad // tr,),
        in_specs=[
            pl.BlockSpec((tr, hidden), lambda i: (i, 0)),
            pl.BlockSpec((tr, hidden), lambda i: (i, 0)),
        ],
        out_specs=pl.BlockSpec((tr, hidden), lambda i: (i, 0)),
        compiler_params=pltpu.CompilerParams(
            dimension_semantics=("parallel",)),
    )(xp, yp)
    return out[:rows]


def sublayer_connection(x, gamma, beta, sublayer_fn):
    """General path: x + dropout(sublayer(LayerNorm(x))) for ANY same-size
    sublayer.  sublayer_fn maps a [rows, hidden] array to [rows, hidden]."""
    batch, seq, hidden = x.shape
    x2d = x.reshape(batch * seq, hidden)
    normed = pallas_layernorm(x2d, gamma, beta)
    sub_out = sublayer_fn(normed)
    out2d = pallas_residual_add(x2d, sub_out)
    return out2d.reshape(batch, seq, hidden)


# ----------------------------- demo / check ---------------------------------

def _reference(x, gamma, beta, w, b):
    mean = jnp.mean(x, axis=-1, keepdims=True)
    var = jnp.mean(jnp.square(x - mean), axis=-1, keepdims=True)
    normed = (x - mean) / jnp.sqrt(var + _LN_EPS) * gamma + beta
    sub = jnp.einsum("bsh,hk->bsk", normed, w,
                     precision=jax.lax.Precision.HIGHEST) + b
    return x + sub


if __name__ == "__main__":
    batch, seq, hidden = 2, 8, 128    # hidden multiple of 128 -> lane-dense tiles

    key = jax.random.PRNGKey(0)
    kx, kw, kb = jax.random.split(key, 3)

    x = jax.random.normal(kx, (batch, seq, hidden), dtype=jnp.float32)
    gamma = jnp.ones((hidden,), dtype=jnp.float32)   # torch LayerNorm default init
    beta = jnp.zeros((hidden,), dtype=jnp.float32)
    w = jax.random.normal(kw, (hidden, hidden), dtype=jnp.float32) * 0.02
    b = jax.random.normal(kb, (hidden,), dtype=jnp.float32) * 0.02

    ref = _reference(x, gamma, beta, w, b)

    # Fused fast path: LN + Linear + bias + residual in one pallas_call.
    out_fused = jax.block_until_ready(
        sublayer_connection_fused_linear(x, gamma, beta, w, b))
    assert out_fused.shape == (batch, seq, hidden)
    assert jnp.allclose(out_fused, ref, atol=5e-3, rtol=5e-3), \
        "fused path mismatch vs reference"

    # Generic path with an arbitrary (here plain-JAX linear) sublayer.
    out_gen = jax.block_until_ready(
        sublayer_connection(x, gamma, beta, lambda t: t @ w + b))
    assert jnp.allclose(out_gen, ref, atol=5e-3, rtol=5e-3), \
        "generic path mismatch vs reference"

    print("KERNEL_OK")
</pallas_src>

<mosaic_0001>
module attributes {stable_mosaic.version = 11 : i64} {
  func.func @_fused_ln_linear_residual_kernel(%arg0: i32, %arg1: memref<16x128xf32, #tpu.memory_space<vmem>>, %arg2: memref<1x128xf32, #tpu.memory_space<vmem>>, %arg3: memref<1x128xf32, #tpu.memory_space<vmem>>, %arg4: memref<128x128xf32, #tpu.memory_space<vmem>>, %arg5: memref<1x128xf32, #tpu.memory_space<vmem>>, %arg6: memref<16x128xf32, #tpu.memory_space<vmem>>) attributes {dimension_semantics = [#tpu.dimension_semantics<parallel>], iteration_bounds = array<i64: 1>, scalar_prefetch = 0 : i64, scratch_operands = 0 : i64, tpu.core_type = #tpu.core_type<tc>, window_params = [{transform_indices = @transform_0, window_bounds = array<i64: 16, 128>}, {pipeline_mode = #tpu.pipeline_mode<synchronous>, transform_indices = @transform_1, window_bounds = array<i64: 1, 128>}, {pipeline_mode = #tpu.pipeline_mode<synchronous>, transform_indices = @transform_2, window_bounds = array<i64: 1, 128>}, {pipeline_mode = #tpu.pipeline_mode<synchronous>, transform_indices = @transform_3, window_bounds = array<i64: 128, 128>}, {pipeline_mode = #tpu.pipeline_mode<synchronous>, transform_indices = @transform_4, window_bounds = array<i64: 1, 128>}, {transform_indices = @transform_5, window_bounds = array<i64: 16, 128>}]} {
    %c0 = arith.constant 0 : index
    %c0_0 = arith.constant 0 : index
    %0 = vector.load %arg1[%c0, %c0_0] : memref<16x128xf32, #tpu.memory_space<vmem>>, vector<16x128xf32>
    %cst = arith.constant dense<0.000000e+00> : vector<16xf32>
    %1 = vector.multi_reduction <add>, %0, %cst [1] : vector<16x128xf32> to vector<16xf32>
    %2 = vector.shape_cast %1 : vector<16xf32> to vector<16x1xf32>
    %cst_1 = arith.constant 1.280000e+02 : f32
    %3 = vector.broadcast %cst_1 : f32 to vector<16x1xf32>
    %4 = arith.divf %2, %3 : vector<16x1xf32>
    %5 = vector.broadcast %4 : vector<16x1xf32> to vector<16x128xf32>
    %6 = arith.subf %0, %5 : vector<16x128xf32>
    %7 = arith.mulf %6, %6 : vector<16x128xf32>
    %cst_2 = arith.constant dense<0.000000e+00> : vector<16xf32>
    %8 = vector.multi_reduction <add>, %7, %cst_2 [1] : vector<16x128xf32> to vector<16xf32>
    %9 = vector.shape_cast %8 : vector<16xf32> to vector<16x1xf32>
    %cst_3 = arith.constant 1.280000e+02 : f32
    %10 = vector.broadcast %cst_3 : f32 to vector<16x1xf32>
    %11 = arith.divf %9, %10 : vector<16x1xf32>
    %cst_4 = arith.constant 9.99999974E-6 : f32
    %12 = vector.broadcast %cst_4 : f32 to vector<16x1xf32>
    %13 = arith.addf %11, %12 : vector<16x1xf32>
    %14 = math.rsqrt %13 : vector<16x1xf32>
    %15 = vector.broadcast %4 : vector<16x1xf32> to vector<16x128xf32>
    %16 = arith.subf %0, %15 : vector<16x128xf32>
    %17 = vector.broadcast %14 : vector<16x1xf32> to vector<16x128xf32>
    %18 = arith.mulf %16, %17 : vector<16x128xf32>
    %c0_5 = arith.constant 0 : index
    %c0_6 = arith.constant 0 : index
    %19 = vector.load %arg2[%c0_5, %c0_6] : memref<1x128xf32, #tpu.memory_space<vmem>>, vector<1x128xf32>
    %20 = vector.broadcast %19 : vector<1x128xf32> to vector<16x128xf32>
    %21 = arith.mulf %18, %20 : vector<16x128xf32>
    %c0_7 = arith.constant 0 : index
    %c0_8 = arith.constant 0 : index
    %22 = vector.load %arg3[%c0_7, %c0_8] : memref<1x128xf32, #tpu.memory_space<vmem>>, vector<1x128xf32>
    %23 = vector.broadcast %22 : vector<1x128xf32> to vector<16x128xf32>
    %24 = arith.addf %21, %23 : vector<16x128xf32>
    %c0_9 = arith.constant 0 : index
    %c0_10 = arith.constant 0 : index
    %25 = vector.load %arg4[%c0_9, %c0_10] : memref<128x128xf32, #tpu.memory_space<vmem>>, vector<128x128xf32>
    %cst_11 = arith.constant dense<0.000000e+00> : vector<16x128xf32>
    %26 = tpu.matmul %24, %25, %cst_11 {dimension_numbers = #tpu.dot_dimension_numbers<[1], [0], [0], [1], [0, 0, 1, 1], [], []>} : vector<16x128xf32>, vector<128x128xf32>, vector<16x128xf32> -> vector<16x128xf32>
    %27 = arith.addf %0, %26 : vector<16x128xf32>
    %c0_12 = arith.constant 0 : index
    %c0_13 = arith.constant 0 : index
    %28 = vector.load %arg5[%c0_12, %c0_13] : memref<1x128xf32, #tpu.memory_space<vmem>>, vector<1x128xf32>
    %29 = vector.broadcast %28 : vector<1x128xf32> to vector<16x128xf32>
    %30 = arith.addf %27, %29 : vector<16x128xf32>
    %c0_14 = arith.constant 0 : index
    %c0_15 = arith.constant 0 : index
    %31 = vector.load %arg6[%c0_14, %c0_15] : memref<16x128xf32, #tpu.memory_space<vmem>>, vector<16x128xf32>
    tpu.vector_store %arg6[%c0_14, %c0_15], %30 {strides = array<i32>} : memref<16x128xf32, #tpu.memory_space<vmem>>, vector<16x128xf32>,
    return
  }
  func.func @transform_0(%arg0: i32) -> (i32, i32) {
    %c0_i32 = arith.constant 0 : i32
    %c0_i32_0 = arith.constant 0 : i32
    return %arg0, %c0_i32 : i32, i32
  }
  func.func @transform_1(%arg0: i32) -> (i32, i32) {
    %c0_i32 = arith.constant 0 : i32
    %c0_i32_0 = arith.constant 0 : i32
    %c0_i32_1 = arith.constant 0 : i32
    return %c0_i32, %c0_i32_0 : i32, i32
  }
  func.func @transform_2(%arg0: i32) -> (i32, i32) {
    %c0_i32 = arith.constant 0 : i32
    %c0_i32_0 = arith.constant 0 : i32
    %c0_i32_1 = arith.constant 0 : i32
    return %c0_i32, %c0_i32_0 : i32, i32
  }
  func.func @transform_3(%arg0: i32) -> (i32, i32) {
    %c0_i32 = arith.constant 0 : i32
    %c0_i32_0 = arith.constant 0 : i32
    %c0_i32_1 = arith.constant 0 : i32
    return %c0_i32, %c0_i32_0 : i32, i32
  }
  func.func @transform_4(%arg0: i32) -> (i32, i32) {
    %c0_i32 = arith.constant 0 : i32
    %c0_i32_0 = arith.constant 0 : i32
    %c0_i32_1 = arith.constant 0 : i32
    return %c0_i32, %c0_i32_0 : i32, i32
  }
  func.func @transform_5(%arg0: i32) -> (i32, i32) {
    %c0_i32 = arith.constant 0 : i32
    %c0_i32_0 = arith.constant 0 : i32
    return %arg0, %c0_i32 : i32, i32
  }
}

</mosaic_0001>

<bundles_post_ra>
// kernel: tpu_custom_call.1
= control target key start
LH: loop header
LB: loop body
LE: loop exit
PB: predicated region body
PF: predicated region fallthrough
CT: control target
= control target key end

     0   :  { %10 = vsyncpa [#allocation3], 0  ;;  %s482_s0 = inlined_call_operand.hbm [shape: f32[16,128], index: 0, kind: input, shape index: {}]   ;;  %s483_s1 = inlined_call_operand.vmem [shape: f32[1,128], index: 1, kind: input, shape index: {}]   ;;  %s484_s2 = inlined_call_operand.vmem [shape: f32[1,128], index: 2, kind: input, shape index: {}]   ;;  %s485_s3 = inlined_call_operand.hbm [shape: f32[128,128], index: 3, kind: input, shape index: {}]   ;;  %s486_s4 = inlined_call_operand.vmem [shape: f32[1,128], index: 4, kind: input, shape index: {}]   ;;  %s487_s5 = inlined_call_operand.hbm [shape: f32[16,128], index: 5, kind: output, shape index: {}]  }
   0x1   :  { %11 = vsyncpa [#allocation6], 0 }
   0x2   :  { %12 = vsyncpa [#allocation4], 0  ;;  %s383_s18 = smov [#allocation2]   ;;  %s311_s22 = scalar_lea.hbm %s482_s0, 256 }
   0x3   :  { %s18_s19 = sshll.u32 %s383_s18, 4  ;;  %p312_p0 = scmp.ne.s32.totalorder %s482_s0, %s311_s22  ;;  %s19_s19 = int_to_ptr.vmem [resolvable:$true] %s18_s19 }
   0x4   :  { %p315_p1 = scmp.lt.u32.totalorder %s311_s22, %s482_s0 }
   0x6   :  { %p317_p2 = pnand %p315_p1, %p312_p0 }
   0x8   :  { %320 = shalt.err (!%p317_p2)
}
   0x9   :  { %s321_s27 = scalar_lea.vmem %s19_s19, 256  ;;  %p326_p4 = scmp.lt.s32.totalorder %s19_s19, %s19_s19 }
   0xa   :  { %p322_p3 = scmp.ne.s32.totalorder %s19_s19, %s321_s27  ;;  %p327_p5 = scmp.lt.s32.totalorder %s321_s27, %s321_s27 }
   0xc   :  { %p328_p6 = por %p327_p5, %p326_p4 }
   0xe   :  { %p329_p7 = pnand %p328_p6, %p322_p3 }
  0x10   :  { %332 = shalt.err (!%p329_p7)
}
  0x11   :  { %s384_s28 = smov 128   ;;  %s385_s29 = smov 8  }
  0x12   :  { %24 = dma.hbm_to_vmem [thread:$0]  %s482_s0, 256, %s19_s19, [#allocation3], %s384_s28, %s384_s28, %s385_s29  }
  0x13   :  { %s386_s7 = smov [#allocation5]   ;;  %s333_s11 = scalar_lea.hbm %s485_s3, 2048 }
  0x14   :  { %s34_s8 = sshll.u32 %s386_s7, 4  ;;  %p334_p8 = scmp.ne.s32.totalorder %s485_s3, %s333_s11  ;;  %s35_s8 = int_to_ptr.vmem [resolvable:$true] %s34_s8 }
  0x15   :  { %p337_p9 = scmp.lt.u32.totalorder %s333_s11, %s485_s3 }
  0x17   :  { %p339_p10 = pnand %p337_p9, %p334_p8 }
  0x19   :  { %342 = shalt.err (!%p339_p10)
}
  0x1a   :  { %s343_s16 = scalar_lea.vmem %s35_s8, 2048  ;;  %p348_p12 = scmp.lt.s32.totalorder %s35_s8, %s35_s8 }
  0x1b   :  { %p344_p11 = scmp.ne.s32.totalorder %s35_s8, %s343_s16  ;;  %p349_p13 = scmp.lt.s32.totalorder %s343_s16, %s343_s16 }
  0x1d   :  { %p350_p0 = por %p349_p13, %p348_p12 }
  0x1f   :  { %p351_p1 = pnand %p350_p0, %p344_p11 }
  0x21   :  { %354 = shalt.err (!%p351_p1)
}
  0x22   :  { %40 = dma.hbm_to_vmem [thread:$0]  %s485_s3, 2048, %s35_s8, [#allocation6], %s384_s28, %s384_s28, %s385_s29  }
  0x23   :  { %377 = dma.done.wait [#allocation3], 256  }
  0x24   :  { %378 = vsyncadd [#allocation3], 4294967040 }
  0x25   :  { %379 = dma.done.wait [#allocation6], 2048  }
  0x26   :  { %380 = vsyncadd [#allocation6], 4294965248  ;;  %v448_v0 = vld [vmem:[#allocation2] sm:$0xff]  ;;  %v451_v1 = vld [vmem:[#allocation2 + $0x8] sm:$0xff] }
  0x27   :  { %51 = vadd.xlane.f32.xlu0 %v448_v0  ;;  %v92_v2 = vld [vmem:[#allocation5] sm:$0xff]  ;;  %v93_v3 = vld [vmem:[#allocation5 + $0x8] sm:$0xff]  ;;  %v94_v4 = vld [vmem:[#allocation5 + $0x10] sm:$0xff] }
  0x28   :  { %v270_v5 = vpack.c.bf16 %v93_v3, %v92_v2  ;;  %v95_v6 = vld [vmem:[#allocation5 + $0x18] sm:$0xff]  ;;  %v96_v16 = vld [vmem:[#allocation5 + $0x20] sm:$0xff]  ;;  %v97_v17 = vld [vmem:[#allocation5 + $0x28] sm:$0xff] }
  0x29   :  { %v274_v7 = vpack.c.bf16 %v95_v6, %v94_v4  ;;  %v278_v18 = vpack.c.bf16 %v97_v17, %v96_v16  ;;  %v98_v19 = vld [vmem:[#allocation5 + $0x30] sm:$0xff]  ;;  %v99_v20 = vld [vmem:[#allocation5 + $0x38] sm:$0xff]  ;;  %v100_v22 = vld [vmem:[#allocation5 + $0x40] sm:$0xff] }
  0x2a   :  { %271 = vmatprep.subr.bf16.mxu0 %v270_v5  ;;  %v282_v21 = vpack.c.bf16 %v99_v20, %v98_v19  ;;  %v101_v23 = vld [vmem:[#allocation5 + $0x48] sm:$0xff]  ;;  %v102_v25 = vld [vmem:[#allocation5 + $0x50] sm:$0xff]  ;;  %v103_v26 = vld [vmem:[#allocation5 + $0x58] sm:$0xff] }
  0x2b   :  { %53 = vadd.xlane.f32.xlu0 %v451_v1  ;;  %273 = vmatpush3.bf16.msra.mxu0 %v270_v5  ;;  %v286_v24 = vpack.c.bf16 %v101_v23, %v100_v22  ;;  %v104_v27 = vld [vmem:[#allocation5 + $0x60] sm:$0xff]  ;;  %v290_v28 = vpack.c.bf16 %v103_v26, %v102_v25  ;;  %v105_v29 = vld [vmem:[#allocation5 + $0x68] sm:$0xff]  ;;  %v106_v31 = vld [vmem:[#allocation5 + $0x70] sm:$0xff] }
  0x2c   :  { %275 = vmatprep.subr.bf16.mxu0 %v274_v7  ;;  %v294_v30 = vpack.c.bf16 %v105_v29, %v104_v27  ;;  %v107_v32 = vld [vmem:[#allocation5 + $0x78] sm:$0xff]  ;;  %v214_v41 = vld [vmem:[%s483_s1] ss:$0 sm:$0xff]  ;;  %s387_s1 = smov [#allocation7]  }
  0x2d   :  { %v298_v33 = vpack.c.bf16 %v107_v32, %v106_v31  ;;  %v215_v43 = vld [vmem:[%s484_s2] ss:$0 sm:$0xff]  ;;  %s201_s23 = sshll.u32 %s387_s1, 4  ;;  %s202_s23 = int_to_ptr.vmem [resolvable:$true] %s201_s23 }
  0x2e   :  { %v216_v51 = vld [vmem:[%s486_s4] ss:$0 sm:$0xff]  ;;  %s355_s2 = scalar_lea.vmem %s202_s23, 256  ;;  %p360_p3 = scmp.lt.s32.totalorder %s202_s23, %s202_s23 }
  0x2f   :  { %277 = vmatpush3.bf16.msra.mxu0 %v274_v7  ;;  %p356_p2 = scmp.ne.s32.totalorder %s202_s23, %s355_s2  ;;  %p361_p4 = scmp.lt.s32.totalorder %s355_s2, %s355_s2 }
  0x30   :  { %279 = vmatprep.subr.bf16.mxu0 %v278_v18 }
  0x31   :  { %p362_p5 = por %p361_p4, %p360_p3 }
  0x33   :  { %281 = vmatpush3.bf16.msra.mxu0 %v278_v18  ;;  %p363_p6 = pnand %p362_p5, %p356_p2 }
  0x34   :  { %283 = vmatprep.subr.bf16.mxu0 %v282_v21 }
  0x37   :  { %285 = vmatpush3.bf16.msra.mxu0 %v282_v21 }
  0x38   :  { %287 = vmatprep.subr.bf16.mxu0 %v286_v24 }
  0x3b   :  { %289 = vmatpush3.bf16.msra.mxu0 %v286_v24 }
  0x3c   :  { %291 = vmatprep.subr.bf16.mxu0 %v290_v28 }
  0x3f   :  { %293 = vmatpush3.bf16.msra.mxu0 %v290_v28 }
  0x40   :  { %295 = vmatprep.subr.bf16.mxu0 %v294_v30 }
  0x43   :  { %297 = vmatpush3.bf16.msra.mxu0 %v294_v30 }
  0x44   :  { %299 = vmatprep.subr.bf16.mxu0 %v298_v33 }
  0x47   :  { %301 = vmatpush3.bf16.msra.mxu0 %v298_v33 }
  0xb4   :  { %v52_v8 = vpop.xlane.xlu0 %51 }
  0xb5   :  { %v56_v9 = vmul.f32 0.0078125, %v52_v8 }
  0xb7   :  { %v58_v10 = vsub.f32 %v448_v0, %v56_v9 }
  0xb8   :  { %v54_v11 = vpop.xlane.xlu0 %53 }
  0xb9   :  { %v57_v12 = vmul.f32 0.0078125, %v54_v11  ;;  %v60_v13 = vmul.f32 %v58_v10, %v58_v10 }
  0xbb   :  { %v59_v14 = vsub.f32 %v451_v1, %v57_v12  ;;  %62 = vadd.xlane.f32.xlu1 %v60_v13 }
  0xbd   :  { %v61_v15 = vmul.f32 %v59_v14, %v59_v14 }
  0xbf   :  { %64 = vadd.xlane.f32.xlu1 %v61_v15 }
 0x148   :  { %v63_v34 = vpop.xlane.xlu1 %62 }
 0x149   :  { %v66_v35 = vmul.f32 0.0078125, %v63_v34 }
 0x14b   :  { %v68_v36 = vadd.f32 1e-05, %v66_v35 }
 0x14c   :  { %v65_v37 = vpop.xlane.xlu1 %64 }
 0x14d   :  { %307 = vrsqrt.f32 %v68_v36  ;;  %v67_v38 = vmul.f32 0.0078125, %v65_v37 }
 0x14f   :  { %v69_v39 = vadd.f32 1e-05, %v67_v38 }
 0x151   :  { %309 = vrsqrt.f32 %v69_v39 }
 0x157   :  { %v308_v40 = vpop.eup %307 }
 0x158   :  { %v72_v42 = vmul.f32 %v308_v40, %v58_v10 }
 0x15a   :  { %v81_v44 = vmul.f32 %v214_v41, %v72_v42 }
 0x15b   :  { %v310_v45 = vpop.eup %309 }
 0x15c   :  { %v73_v46 = vmul.f32 %v310_v45, %v59_v14  ;;  %v90_v47 = vadd.f32 %v215_v43, %v81_v44 }
 0x15e   :  { %v82_v48 = vmul.f32 %v214_v41, %v73_v46  ;;  %267 = vmatprep.mubr.f32.mxu0 %v90_v47 }
 0x160   :  { %v91_v49 = vadd.f32 %v215_v43, %v82_v48 }
 0x162   :  { %268 = vmatmul.mubr.f32.vlgmr.msra.gmra.mrb[0].mxu0 %v91_v49 }
 0x235   :  { %v269_v50 = vpop.f32.mrb[0].mxu0 }
 0x236   :  { %v184_v52 = vadd.f32 %v269_v50, %v451_v1  ;;  %v174_v53 = vpop.f32.mrb[1].mxu0 }
 0x237   :  { %v183_v54 = vadd.f32 %v174_v53, %v448_v0 }
 0x238   :  { %v193_v55 = vadd.f32 %v216_v51, %v184_v52 }
 0x239   :  { %v192_v56 = vadd.f32 %v216_v51, %v183_v54 }
 0x23a   :  { %195 = vst [vmem:[#allocation7 + $0x8] sm:$0xff] %v193_v55 }
 0x23b   :  { %194 = vst [vmem:[#allocation7] sm:$0xff] %v192_v56 }
 0x23c   :  { %366 = shalt.err (!%p363_p6)
}
 0x23d   :  { %s367_s25 = scalar_lea.hbm %s487_s5, 256 }
 0x23e   :  { %p368_p7 = scmp.ne.s32.totalorder %s487_s5, %s367_s25  ;;  %p371_p8 = scmp.lt.u32.totalorder %s367_s25, %s487_s5 }
 0x240   :  { %p373_p9 = pnand %p371_p8, %p368_p7 }
 0x242   :  { %376 = shalt.err (!%p373_p9)
}
 0x243   :  { %207 = dma.vmem_to_hbm [thread:$0]  %s202_s23, 256, %s487_s5, [#allocation4], %s384_s28, %s384_s28, %s385_s29  }
 0x244   :  { %381 = dma.done.wait [#allocation4], 256  }
 0x245   :  { %382 = vsyncadd [#allocation4], 4294967040 }
 0x246   :  { %211 = vsyncpa [#allocation3], 1 }
 0x247   :  { %212 = vsyncpa [#allocation6], 1 }
 0x248   :  { %213 = vsyncpa [#allocation4], 1 }

</bundles_post_ra>
